<compile_context>
chip_gen: v6e
topology: v6e:2x2x1
jax: 0.10.0
libtpu: 0.0.40
codegen_flags: <defaults>
</compile_context>

<pallas_src>
from collections import Counter

import numpy as np
import jax
import jax.numpy as jnp
from jax.experimental import pallas as pl
from jax.experimental.pallas import tpu as pltpu

MAX_SPAN = 4                 # data.term_span
HIDDEN = 32                  # data.HP_hidden_dim
LANE = 128
FEAT = MAX_SPAN * HIDDEN     # 128 -> one span's flattened features fill exactly one lane column
TARGET_TILE = 2048           # spans per grid step (lane-dense, multiple of 128)
APPROX_RECIPROCAL = True     # EUP approx reciprocal for the softmax denominator


def _cdiv(a, b):
    return -(-a // b)


# ----------------------------------------------------------------------------
# Python glue: faithful ports of the span bookkeeping from SpanRanking
# ----------------------------------------------------------------------------
def get_candidate_span_pairs(seq_lengths, max_span):
    span_pairs = []
    for seq_len in seq_lengths:
        sent = np.arange(seq_len)
        cand_starts = sent.reshape(-1, 1).repeat(max_span, 1)
        span_lengths = np.arange(max_span)
        cand_ends = np.minimum(cand_starts + span_lengths, seq_len - 1)
        sent_span_pairs = []
        for ws, we in zip(cand_starts, cand_ends):
            tmp = [(int(s), int(e) + 1) for s, e in zip(ws, we)]
            tmp = list(set(tmp))
            sent_span_pairs.extend(tmp)
        span_pairs.append(sent_span_pairs)
    return span_pairs


def reformat_labels(golden_labels):
    golden_spans, golden_class, golden_term_num = [], [], []
    for sent_span in golden_labels:
        golden_spans.append([(itm[0], itm[1] + 1) for itm in sent_span])
        golden_class.append([itm[2] for itm in sent_span])
        golden_term_num.append(len(sent_span) if sent_span[0][1] != -1 else 0)
    return golden_spans, golden_class, golden_term_num


def get_gold_index(golden_spans, sent_span_candi, sent_slice):
    golden_ids = []
    golden_sent_ids = [[] for _ in range(len(sent_span_candi))]
    for sid, (gold_, candi_, can_ids) in enumerate(
            zip(golden_spans, sent_span_candi, sent_slice)):
        for gold in gold_:
            try:
                tmp_id = can_ids[candi_.index(gold)]
            except ValueError:
                continue
            golden_ids.append(tmp_id)
            golden_sent_ids[sid].append(tmp_id)
    return golden_ids, golden_sent_ids


def _choose_tiling(n):
    """Lane-dense tiling.  Always returns an EVEN number of grid steps (>= 2) so the
    'parallel' grid axis can shard evenly across v7x's two TensorCores; tile_n is a
    multiple of 128 and capped at TARGET_TILE."""
    n128 = max(LANE, _cdiv(n, LANE) * LANE)
    steps = max(2, _cdiv(n128, TARGET_TILE))
    if steps % 2:
        steps += 1
    tile = _cdiv(_cdiv(n128, steps), LANE) * LANE
    return tile, steps * tile


# ----------------------------------------------------------------------------
# Pallas kernel: fused span attention + scoring + per-element SoftMarginLoss
# ----------------------------------------------------------------------------
def span_score_loss_kernel(spanH_ref, meta_ref, A_ref, b_ref, out_ref):
    x = spanH_ref[...]                                   # [FEAT, TN] bf16, spans on lanes
    A = A_ref[...].astype(jnp.bfloat16)                  # [8, FEAT] fused q / w_score (tiny cast)

    # One wide bf16 MXU matmul, f32 accumulate:
    #   rows 0..L-1  = per-token attention logits  (q . h_l)
    #   rows L..2L-1 = per-token score contributions (w_score . h_l)
    y = jnp.dot(A, x, preferred_element_type=jnp.float32)    # [2L, TN] f32
    logits = y[0:MAX_SPAN, :]                            # [L, TN]
    tok_sc = y[MAX_SPAN:2 * MAX_SPAN, :]                 # [L, TN]

    # packed side data: row0 = span length (>=1 even for padded spans), row1 = target,
    # row2 = loss weight (0 for padded spans)
    meta = meta_ref[...]                                 # [3, TN] f32
    lens = meta[0:1, :]
    tgt = meta[1:2, :]
    wgt = meta[2:3, :]

    # rebuild the token-validity mask in-kernel from the span length (idle-VPU work)
    pos = jax.lax.broadcasted_iota(jnp.int32, logits.shape, 0).astype(jnp.float32)
    mask = (pos < lens).astype(jnp.float32)              # [L, TN]

    # masked softmax over the true span length (tokens on the sublane axis);
    # all elementwise math stays in f32 (v5e has no bf16 VPU/EUP).
    logits = jnp.where(mask > 0.0, logits, -1e30)
    m = jnp.max(logits, axis=0, keepdims=True)           # [1, TN]
    p = jnp.exp(logits - m) * mask
    denom = jnp.sum(p, axis=0, keepdims=True)            # [1, TN], >= exp(0) = 1 by len>=1 guard
    if APPROX_RECIPROCAL:
        w = p * pl.reciprocal(denom, approx=True)        # EUP reciprocal, frees VALU
    else:
        w = p / denom

    # score = w_score . (sum_l w_l h_l) + b  ==  sum_l w_l (w_score . h_l) + b
    b = b_ref[0]                                         # scalar bias from SMEM
    score = jnp.sum(w * tok_sc, axis=0, keepdims=True) + b   # [1, TN]

    # SoftMarginLoss elements: softplus(-y * x), y in {+1, -1, 0(pad)}; stable form; weighted.
    z = -tgt * score
    loss_el = (jnp.maximum(z, 0.0) + jnp.log1p(jnp.exp(-jnp.abs(z)))) * wgt

    # packed lane-dense output: row 0 = score, row 1 = loss element
    out_ref[0:1, :] = score
    out_ref[1:2, :] = loss_el


def compute_span_scores_and_loss(spanH_T, meta_T, A, bias, tile_n):
    feat, n_pad = spanH_T.shape
    grid = (n_pad // tile_n,)
    return pl.pallas_call(
        span_score_loss_kernel,
        out_shape=jax.ShapeDtypeStruct((2, n_pad), jnp.float32),
        grid=grid,
        in_specs=[
            pl.BlockSpec((feat, tile_n), lambda i: (0, i)),          # bf16 span features
            pl.BlockSpec((3, tile_n), lambda i: (0, i)),             # packed len / tgt / wgt
            pl.BlockSpec((2 * MAX_SPAN, feat), lambda i: (0, 0)),    # fused q / w_score constant
            pl.BlockSpec(memory_space=pltpu.MemorySpace.SMEM),       # scalar score bias
        ],
        out_specs=pl.BlockSpec((2, tile_n), lambda i: (0, i)),       # packed score / loss rows
        compiler_params=pltpu.CompilerParams(dimension_semantics=("parallel",)),
    )(spanH_T, meta_T, A, bias)


# ----------------------------------------------------------------------------
# Full forward
# ----------------------------------------------------------------------------
def span_ranking_forward(hidden_states, word_seq_lengths, golden_labels, params):
    B, S, H = hidden_states.shape
    assert H == HIDDEN and MAX_SPAN * H == LANE, "fused layout requires MAX_SPAN*H == 128"
    seq_lengths = [int(l) for l in word_seq_lengths]

    # candidate spans + flattening (bookkeeping glue)
    span_pairs = get_candidate_span_pairs(seq_lengths, MAX_SPAN)
    flat_pairs, flat_sent_ids = [], []
    sentence_slice = [[] for _ in range(B)]
    span_id = 0
    for sid, pairs in enumerate(span_pairs):
        for p in pairs:
            flat_pairs.append(p)
            flat_sent_ids.append(sid)
            sentence_slice[sid].append(span_id)
            span_id += 1
    N = len(flat_pairs)

    # gold / wrong split (mirrors getGoldIndex); wrong = complement of gold
    golden_spans, _, _ = reformat_labels(golden_labels)
    sent_candidates = [[flat_pairs[i] for i in sl] for sl in sentence_slice]
    flat_gold, _ = get_gold_index(golden_spans, sent_candidates, sentence_slice)
    gold_set = set(flat_gold)
    flat_wrong = sorted(set(range(N)) - gold_set)
    M = len(flat_gold) + len(flat_wrong)

    tile_n, Np = _choose_tiling(N)

    # flattened token ids (sid*S + pos) per span slot + packed len/target/weight rows (glue)
    tok_np = np.zeros((Np, MAX_SPAN), np.int32)
    meta_np = np.zeros((3, Np), np.float32)
    meta_np[0, :] = 1.0                                  # len>=1 guard (padded spans too)
    for i, ((st, en), sid) in enumerate(zip(flat_pairs, flat_sent_ids)):
        ln = en - st
        base = sid * S
        tok_np[i, :ln] = base + np.arange(st, en)
        tok_np[i, ln:] = base + st                       # out-of-span slots point at a valid token
        meta_np[0, i] = float(ln)
    # SoftMarginLoss encoding: +1 gold / -1 wrong / 0 pad; weight counts duplicate gold hits
    # and zeroes padded spans.
    meta_np[1, :N] = -1.0
    meta_np[2, :N] = 1.0
    for gi, cnt in Counter(flat_gold).items():
        meta_np[1, gi] = 1.0
        meta_np[2, gi] = float(cnt)

    # Build the lane-dense bf16 span slab [FEAT, Np] directly (spans on lanes, no pre-masking,
    # no transpose of the big slab): gather columns from the tiny transposed hidden matrix.
    hflatT = hidden_states.astype(jnp.bfloat16).reshape(B * S, H).T       # [H, B*S] (tiny)
    tok = jnp.asarray(tok_np)                                             # [Np, L] int32
    spanH_T = jnp.concatenate(
        [jnp.take(hflatT, tok[:, l], axis=1) for l in range(MAX_SPAN)], axis=0)   # [FEAT, Np] bf16
    meta_T = jnp.asarray(meta_np)                                         # [3, Np] f32

    # fused constant operand: rows 0..L-1 hold q = linear_in(termWeight) block-diagonally,
    # rows L..2L-1 hold the spanEmb2Score weight block-diagonally.
    q = params["W_in"] @ params["termWeight"] + params["b_in"]            # TermAttention.linear_in
    ws = params["w_score"].reshape(H)
    eyeL = jnp.eye(MAX_SPAN, dtype=jnp.float32)
    A = jnp.concatenate([jnp.kron(eyeL, q.reshape(1, H)),
                         jnp.kron(eyeL, ws.reshape(1, H))], axis=0).astype(jnp.float32)
    bias = params["b_score"].reshape(1).astype(jnp.float32)

    # --- Pallas hot path: fused span attention + scoring + loss elements ---
    out2 = compute_span_scores_and_loss(spanH_T, meta_T, A, bias, tile_n)

    term_scores = out2[0, :N]                            # [N]
    loss = jnp.sum(out2[1, :]) / jnp.float32(M)          # SoftMarginLoss, reduction='mean'

    # precision @ K (glue; mirrors torch sort + membership test)
    reindex = jnp.argsort(-term_scores)                  # descending
    total_words = float(sum(seq_lengths))
    K = int(np.floor(total_words * 0.3))
    predicted = np.asarray(reindex[:K])
    predicted_right = sum(1 for pix in predicted if int(pix) in gold_set)
    precision = float(predicted_right) / float(K)

    return loss, precision


# ----------------------------------------------------------------------------
if __name__ == "__main__":
    B, S, H = 2, 8, HIDDEN
    key = jax.random.PRNGKey(0)
    k1, k2, k3, k4, k5, k6 = jax.random.split(key, 6)

    params = {
        "termWeight": jax.random.normal(k1, (H,), jnp.float32),           # nn.Parameter(randn(H))
        "W_in": jax.random.normal(k2, (H, H), jnp.float32) * 0.1,         # TermAttention.linear_in
        "b_in": jax.random.normal(k3, (H,), jnp.float32) * 0.1,
        "w_score": jax.random.normal(k4, (1, H), jnp.float32) * 0.1,      # spanEmb2Score
        "b_score": jax.random.normal(k5, (1, 1), jnp.float32) * 0.1,
    }

    hidden_states = jax.random.normal(k6, (B, S, H), jnp.float32)
    word_seq_lengths = np.array([8, 6], np.int32)
    # batch_label format: per sentence list of (start, end_inclusive, class_id)
    golden_labels = [
        [(1, 2, 0), (4, 6, 1)],
        [(0, 1, 2)],
    ]

    loss, precision = span_ranking_forward(hidden_states, word_seq_lengths,
                                           golden_labels, params)
    jax.block_until_ready(loss)
    assert np.isfinite(float(loss))
    assert 0.0 <= precision <= 1.0
    print("KERNEL_OK")
</pallas_src>

<mosaic_0001>
module attributes {stable_mosaic.version = 11 : i64} {
  func.func @span_score_loss_kernel(%arg0: i32, %arg1: memref<128x128xbf16, #tpu.memory_space<vmem>>, %arg2: memref<3x128xf32, #tpu.memory_space<vmem>>, %arg3: memref<8x128xf32, #tpu.memory_space<vmem>>, %arg4: memref<1xf32, #tpu.memory_space<smem>>, %arg5: memref<2x128xf32, #tpu.memory_space<vmem>>) attributes {dimension_semantics = [#tpu.dimension_semantics<parallel>], iteration_bounds = array<i64: 2>, scalar_prefetch = 0 : i64, scratch_operands = 0 : i64, tpu.core_type = #tpu.core_type<tc>, window_params = [{transform_indices = @transform_0, window_bounds = array<i64: 128, 128>}, {transform_indices = @transform_1, window_bounds = array<i64: 3, 128>}, {pipeline_mode = #tpu.pipeline_mode<synchronous>, transform_indices = @transform_2, window_bounds = array<i64: 8, 128>}, {transform_indices = @transform_3, window_bounds = array<i64: 1>}, {transform_indices = @transform_4, window_bounds = array<i64: 2, 128>}]} {
    %c0 = arith.constant 0 : index
    %c0_0 = arith.constant 0 : index
    %0 = vector.load %arg1[%c0, %c0_0] : memref<128x128xbf16, #tpu.memory_space<vmem>>, vector<128x128xbf16>
    %c0_1 = arith.constant 0 : index
    %c0_2 = arith.constant 0 : index
    %1 = vector.load %arg3[%c0_1, %c0_2] : memref<8x128xf32, #tpu.memory_space<vmem>>, vector<8x128xf32>
    %2 = arith.truncf %1 : vector<8x128xf32> to vector<8x128xbf16>
    %cst = arith.constant dense<0.000000e+00> : vector<8x128xf32>
    %3 = tpu.matmul %2, %0, %cst {dimension_numbers = #tpu.dot_dimension_numbers<[1], [0], [0], [1], [0, 0, 1, 1], [], []>} : vector<8x128xbf16>, vector<128x128xbf16>, vector<8x128xf32> -> vector<8x128xf32>
    %4 = vector.extract_strided_slice %3 {offsets = [0, 0], sizes = [4, 128], strides = [1, 1]} : vector<8x128xf32> to vector<4x128xf32>
    %5 = vector.extract_strided_slice %3 {offsets = [4, 0], sizes = [4, 128], strides = [1, 1]} : vector<8x128xf32> to vector<4x128xf32>
    %c0_3 = arith.constant 0 : index
    %c0_4 = arith.constant 0 : index
    %6 = vector.load %arg2[%c0_3, %c0_4] : memref<3x128xf32, #tpu.memory_space<vmem>>, vector<3x128xf32>
    %7 = vector.extract_strided_slice %6 {offsets = [0, 0], sizes = [1, 128], strides = [1, 1]} : vector<3x128xf32> to vector<1x128xf32>
    %8 = vector.extract_strided_slice %6 {offsets = [1, 0], sizes = [1, 128], strides = [1, 1]} : vector<3x128xf32> to vector<1x128xf32>
    %9 = vector.extract_strided_slice %6 {offsets = [2, 0], sizes = [1, 128], strides = [1, 1]} : vector<3x128xf32> to vector<1x128xf32>
    %10 = tpu.iota {dimensions = array<i32: 0>} : vector<4x128xi32>
    %11 = arith.sitofp %10 : vector<4x128xi32> to vector<4x128xf32>
    %12 = vector.broadcast %7 : vector<1x128xf32> to vector<4x128xf32>
    %13 = arith.cmpf olt, %11, %12 : vector<4x128xf32>
    %14 = arith.extui %13 : vector<4x128xi1> to vector<4x128xi32>
    %15 = arith.sitofp %14 : vector<4x128xi32> to vector<4x128xf32>
    %cst_5 = arith.constant 0.000000e+00 : f32
    %16 = vector.broadcast %cst_5 : f32 to vector<4x128xf32>
    %17 = arith.cmpf ogt, %15, %16 : vector<4x128xf32>
    %cst_6 = arith.constant -1.000000e+30 : f32
    %18 = vector.broadcast %cst_6 : f32 to vector<4x128xf32>
    %19 = arith.select %17, %4, %18 : vector<4x128xi1>, vector<4x128xf32>
    %cst_7 = arith.constant dense<0xFF800000> : vector<128xf32>
    %20 = vector.multi_reduction <maximumf>, %19, %cst_7 [0] : vector<4x128xf32> to vector<128xf32>
    %21 = vector.shape_cast %20 : vector<128xf32> to vector<1x128xf32>
    %22 = vector.broadcast %21 : vector<1x128xf32> to vector<4x128xf32>
    %23 = arith.subf %19, %22 : vector<4x128xf32>
    %24 = math.exp %23 : vector<4x128xf32>
    %25 = arith.mulf %24, %15 : vector<4x128xf32>
    %cst_8 = arith.constant dense<0.000000e+00> : vector<128xf32>
    %26 = vector.multi_reduction <add>, %25, %cst_8 [0] : vector<4x128xf32> to vector<128xf32>
    %27 = vector.shape_cast %26 : vector<128xf32> to vector<1x128xf32>
    %28 = tpu.reciprocal %27 {approx = true} : vector<1x128xf32> -> vector<1x128xf32>
    %29 = vector.broadcast %28 : vector<1x128xf32> to vector<4x128xf32>
    %30 = arith.mulf %25, %29 : vector<4x128xf32>
    %c0_9 = arith.constant 0 : index
    %31 = memref.load %arg4[%c0_9] : memref<1xf32, #tpu.memory_space<smem>>
    %32 = arith.mulf %30, %5 : vector<4x128xf32>
    %cst_10 = arith.constant dense<0.000000e+00> : vector<128xf32>
    %33 = vector.multi_reduction <add>, %32, %cst_10 [0] : vector<4x128xf32> to vector<128xf32>
    %34 = vector.shape_cast %33 : vector<128xf32> to vector<1x128xf32>
    %35 = vector.broadcast %31 : f32 to vector<1x128xf32>
    %36 = arith.addf %34, %35 : vector<1x128xf32>
    %cst_11 = arith.constant 0.000000e+00 : f32
    %37 = vector.broadcast %cst_11 : f32 to vector<1x128xf32>
    %38 = arith.subf %37, %8 : vector<1x128xf32>
    %39 = arith.mulf %38, %36 : vector<1x128xf32>
    %cst_12 = arith.constant 0.000000e+00 : f32
    %40 = vector.broadcast %cst_12 : f32 to vector<1x128xf32>
    %41 = arith.maximumf %39, %40 : vector<1x128xf32>
    %42 = math.absf %39 : vector<1x128xf32>
    %cst_13 = arith.constant 0.000000e+00 : f32
    %43 = vector.broadcast %cst_13 : f32 to vector<1x128xf32>
    %44 = arith.subf %43, %42 : vector<1x128xf32>
    %45 = math.exp %44 : vector<1x128xf32>
    %46 = math.log1p %45 : vector<1x128xf32>
    %47 = arith.addf %41, %46 : vector<1x128xf32>
    %48 = arith.mulf %47, %9 : vector<1x128xf32>
    %c0_14 = arith.constant 0 : index
    %c0_15 = arith.constant 0 : index
    %49 = vector.load %arg5[%c0_14, %c0_15] : memref<2x128xf32, #tpu.memory_space<vmem>>, vector<1x128xf32>
    tpu.vector_store %arg5[%c0_14, %c0_15], %36 {strides = array<i32>} : memref<2x128xf32, #tpu.memory_space<vmem>>, vector<1x128xf32>,
    %c1 = arith.constant 1 : index
    %c0_16 = arith.constant 0 : index
    %50 = vector.load %arg5[%c1, %c0_16] : memref<2x128xf32, #tpu.memory_space<vmem>>, vector<1x128xf32>
    tpu.vector_store %arg5[%c1, %c0_16], %48 {strides = array<i32>} : memref<2x128xf32, #tpu.memory_space<vmem>>, vector<1x128xf32>,
    return
  }
  func.func @transform_0(%arg0: i32) -> (i32, i32) {
    %c0_i32 = arith.constant 0 : i32
    %c0_i32_0 = arith.constant 0 : i32
    return %c0_i32, %arg0 : i32, i32
  }
  func.func @transform_1(%arg0: i32) -> (i32, i32) {
    %c0_i32 = arith.constant 0 : i32
    %c0_i32_0 = arith.constant 0 : i32
    return %c0_i32, %arg0 : i32, i32
  }
  func.func @transform_2(%arg0: i32) -> (i32, i32) {
    %c0_i32 = arith.constant 0 : i32
    %c0_i32_0 = arith.constant 0 : i32
    %c0_i32_1 = arith.constant 0 : i32
    return %c0_i32, %c0_i32_0 : i32, i32
  }
  func.func @transform_3(%arg0: i32) -> i32 {
    %c0_i32 = arith.constant 0 : i32
    %c0_i32_0 = arith.constant 0 : i32
    return %c0_i32 : i32
  }
  func.func @transform_4(%arg0: i32) -> (i32, i32) {
    %c0_i32 = arith.constant 0 : i32
    %c0_i32_0 = arith.constant 0 : i32
    return %c0_i32, %arg0 : i32, i32
  }
}

</mosaic_0001>

<bundles_post_ra>
// kernel: tpu_custom_call.1
= control target key start
LH: loop header
LB: loop body
LE: loop exit
PB: predicated region body
PF: predicated region fallthrough
CT: control target
= control target key end

     0   :  { %s1125_s0 = inlined_call_operand.hbm [shape: bf16[128,256], index: 0, kind: input, shape index: {}]   ;;  %s1126_s1 = inlined_call_operand.hbm [shape: f32[3,256], index: 1, kind: input, shape index: {}]   ;;  %s1127_s2 = inlined_call_operand.hbm [shape: f32[8,128], index: 2, kind: input, shape index: {}]   ;;  %s1128_s3 = inlined_call_operand.<no memory space> [shape: f32[1], index: 3, kind: input, shape index: {}]   ;;  %s1129_s4 = inlined_call_operand.hbm [shape: f32[2,256], index: 4, kind: output, shape index: {}]  }
   0x1   :  { %1134 = sst [smem:[#allocation14_spill]] %s1125_s0 }
   0x2   :  { %1135 = sst [smem:[#allocation15_spill]] %s1127_s2 }
   0x3   :  { %9 = sst [smem:[#allocation2]] %s1128_s3 }
   0x4   :  { %10 = vsyncpa [#allocation4], 0 }
   0x5   :  { %12 = vsyncpa [#allocation4 + $0x1], 0 }
   0x6   :  { %13 = vsyncpa [#allocation7], 0 }
   0x7   :  { %15 = vsyncpa [#allocation7 + $0x1], 0 }
   0x8   :  { %16 = vsyncpa [#allocation5], 0 }
   0x9   :  { %18 = vsyncpa [#allocation5 + $0x1], 0  ;;  %s890_s17 = smov 0   ;;  %s892_s18 = smov 0  }
   0xa   :  { %s894_s19 = smov 0   ;;  %s896_s20 = smov 0  }
   0xb LB: > { %s911_s3 = sadd.s32 4294967295, %s851_s20   ;;  %s559_s21 = sadd.s32 4294967294, %s851_s20   ;;  %s851_s20 = sphi %s896_s20, %s1156_s20   ;;  %s847_s19 = sphi %s894_s19, %s1155_s19   ;;  %s843_s18 = sphi %s892_s18, %s1154_s18   ;;  %s839_s17 = sphi %s890_s17, %s1153_s17  }
   0xc   : > { %s915_s22 = sadd.s32 1, %s851_s20   ;;  %s31_s23 = sadd.s32 1, %s847_s19 }
   0xd   : > { %s28_s24 = ssub.s32 %s851_s20, %s915_s22  ;;  %p38_p0 = scmp.ne.s32.totalorder %s847_s19, %s843_s18 }
   0xe   : > { %p29_p1 = scmp.eq.s32.totalorder %s28_s24, 0  ;;  %p39_p2 = scmp.eq.s32.totalorder %s851_s20, 0 }
   0xf   : > { %p44_p3 = scmp.ne.s32.totalorder %s843_s18, %s839_s17  ;;  %p1130_p4 = scmp.eq.s32.totalorder %s911_s3, 0 }
  0x10   : > { %s927_s25 = scalar_select %p29_p1, %s847_s19, %s31_s23  }
  0x11   : > { %p929_p5 = por %p39_p2, %p38_p0  ;;  %p935_p6 = por %p1130_p4, %p44_p3 }
  0x12   : > { %p136_p7 = scmp.eq.s32.totalorder %s911_s3, 1  ;;  %p142_p8 = scmp.eq.s32.totalorder %s559_s21, 1 }
  0x13   : > { %s1137_s27 = scalar_select %p935_p6, 1, 0 }
  0x14   : > { %p560_p9 = scmp.ge.s32.totalorder %s851_s20, 1  ;;  %p149_p10 = scmp.lt.s32.totalorder %s851_s20, 3 }
  0x15   : > { %p942_p11 = por %p136_p7, %p38_p0  ;;  %p946_p12 = por %p142_p8, %p44_p3 }
  0x16   : > { %p950_p13 = pnand %p560_p9, %p149_p10  ;;  %s853_s5 = smov [#allocation8]  }
  0x17   : > { %s1138_s28 = scalar_select %p942_p11, 1, 0 }
  0x18   : > { %s1139_s29 = scalar_select %p946_p12, 1, 0 }
  0x19   : > { %s1140_s30 = scalar_select %p950_p13, 1, 0 }
  0x1a   : > { %p624_p2 = pneg %p950_p13  ;;  %s162_s6 = sshll.u32 %s853_s5, 4  ;;  %s163_s6 = int_to_ptr.vmem [resolvable:$true] %s162_s6 }
  0x1b   : > { %p640_p4 = scmp.lt.s32.totalorder %s851_s20, 2  ;;  %p1141_p0 = scmp.eq.s32.totalorder %s911_s3, 0 }
  0x1c   : > { %s965_s8 = sand.u32 1, %s847_s19   ;;  %s708_s11 = scalar_lea.vmem %s163_s6, 128 }
  0x1d   : > { %p960_p7 = pnand %p624_p2, %p1141_p0  ;;  %p969_p3 = pnand %p640_p4, %p929_p5 }
  0x1e   : > { %s563_s10 = sshll.u32 %s965_s8, 6  ;;  %p709_p9 = scmp.ne.s32.totalorder %s163_s6, %s708_s11 }
  0x1f   : > { %p699_p8 = pneg %p960_p7  ;;  %p716_p2 = scmp.lt.s32.totalorder %s163_s6, %s163_s6 }
  0x20   : > { %p717_p0 = scmp.lt.s32.totalorder %s708_s11, %s708_s11 }
  0x21   : > { %p711_p10 = pnand %p709_p9, %p699_p8 }
  0x22   : > { %p718_p12 = por %p717_p0, %p716_p2 }
  0x23   : > { %p712_p1 = pneg %p711_p10 }
  0x25   : > { %p719_p11 = pnand %p718_p12, %p712_p1 }
  0x27   : > { %722 = shalt.err (!%p719_p11)
}
  0x28   : > { %s1144_s2 = sld [smem:[#allocation15_spill]]  ;;  %s564_s14 = sshll.u32 %s851_s20, 6 }
  0x29   : > { %s180_s15 = scalar_lea.vmem [#allocation3], %s563_s10  ;;  %s1145_s0 = sld [smem:[#allocation14_spill]] }
  0x2a   : > { %s186_s16 = sshll.u32 %s180_s15, 4  ;;  %s196_s26 = sand.u32 1, %s851_s20   ;;  %s989_s16 = int_to_ptr.vmem [resolvable:$true] %s186_s16 }
  0x2b   : > { %s177_s5 = scalar_lea.sflag [#allocation4], %s965_s8  ;;  %p725_p5 = pneg %p969_p3 }
  0x2e   : > { %627 = dma.hbm_to_vmem [thread:$0]  (!%p960_p7), %s1144_s2, 128, %s163_s6, [#allocation7]  }
  0x2f   : > { %s987_s24 = scalar_lea.hbm %s1145_s0, %s564_s14  ;;  %s728_s11 = scalar_lea.hbm %s1145_s0, 2048 }
  0x30   : > { %s723_s7 = scalar_lea.hbm %s987_s24, 1024  ;;  %p729_p1 = scmp.lt.s32.totalorder %s987_s24, %s1145_s0 }
  0x31   : > { %p724_p4 = scmp.ne.s32.totalorder %s987_s24, %s723_s7  ;;  %p730_p7 = scmp.lt.s32.totalorder %s728_s11, %s723_s7 }
  0x33   : > { %p726_p11 = pnand %p725_p5, %p724_p4  ;;  %p731_p8 = por %p730_p7, %p729_p1 }
  0x35   : > { %p727_p12 = pneg %p726_p11 }
  0x37   : > { %p732_p9 = pnand %p731_p8, %p727_p12 }
  0x39   : > { %735 = shalt.err (!%p732_p9)
}
  0x3a   : > { %s736_s15 = scalar_lea.vmem %s989_s16, 1024  ;;  %s854_s21 = smov [#allocation3]  }
  0x3b   : > { %p737_p10 = scmp.ne.s32.totalorder %s989_s16, %s736_s15  ;;  %s741_s23 = sshll.u32 %s854_s21, 4  ;;  %s742_s23 = int_to_ptr.vmem [resolvable:$false] %s741_s23 }
  0x3c   : > { %s743_s6 = scalar_lea.vmem %s742_s23, 2048  ;;  %p744_p4 = scmp.lt.s32.totalorder %s989_s16, %s742_s23 }
  0x3d   : > { %p739_p2 = pnand %p737_p10, %p725_p5  ;;  %p745_p11 = scmp.lt.s32.totalorder %s743_s6, %s736_s15 }
  0x3f   : > { %p740_p0 = pneg %p739_p2  ;;  %p746_p6 = por %p745_p11, %p744_p4 }
  0x41   : > { %p747_p1 = pnand %p746_p6, %p740_p0 }
  0x43   : > { %750 = shalt.err (!%p747_p1)
}
  0x44   : > { %s855_s7 = smov 128   ;;  %s856_s10 = smov 64  }
  0x45   : > { %s857_s11 = smov 4   ;;  %s565_s12 = sshll.u32 %s965_s8, 2 }
  0x46   : > { %631 = dma.hbm_to_vmem [thread:$0]  (!%p969_p3), %s987_s24, 1024, %s989_s16, %s177_s5, %s855_s7, %s856_s10, %s857_s11  }
  0x47   : > { %s1025_s21 = scalar_lea.hbm %s1126_s1, %s564_s14  ;;  %s200_s23 = scalar_lea.vmem [#allocation6], %s565_s12 }
  0x48   : > { %s207_s6 = sshll.u32 %s200_s23, 4  ;;  %s197_s0 = scalar_lea.sflag [#allocation7], %s196_s26  ;;  %s208_s6 = int_to_ptr.vmem [resolvable:$true] %s207_s6 }
  0x49   : > { %s751_s2 = scalar_lea.hbm %s1025_s21, 64  ;;  %s756_s24 = scalar_lea.hbm %s1126_s1, 128 }
  0x4a   : > { %p752_p6 = scmp.ne.s32.totalorder %s1025_s21, %s751_s2  ;;  %p757_p8 = scmp.lt.s32.totalorder %s1025_s21, %s1126_s1 }
  0x4b   : > { %p758_p9 = scmp.lt.s32.totalorder %s756_s24, %s751_s2 }
  0x4c   : > { %p754_p12 = pnand %p752_p6, %p725_p5 }
  0x4d   : > { %p759_p10 = por %p758_p9, %p757_p8 }
  0x4e   : > { %p755_p7 = pneg %p754_p12 }
  0x50   : > { %p760_p2 = pnand %p759_p10, %p755_p7 }
  0x52   : > { %763 = shalt.err (!%p760_p2)
}
  0x53   : > { %s764_s7 = scalar_lea.vmem %s208_s6, 64  ;;  %s858_s26 = smov [#allocation6]  }
  0x54   : > { %p765_p0 = scmp.ne.s32.totalorder %s208_s6, %s764_s7  ;;  %s769_s10 = sshll.u32 %s858_s26, 4  ;;  %s770_s10 = int_to_ptr.vmem [resolvable:$false] %s769_s10 }
  0x55   : > { %s771_s11 = scalar_lea.vmem %s770_s10, 128  ;;  %p772_p1 = scmp.lt.s32.totalorder %s208_s6, %s770_s10 }
  0x56   : > { %p767_p4 = pnand %p765_p0, %p725_p5  ;;  %p773_p6 = scmp.lt.s32.totalorder %s771_s11, %s764_s7 }
  0x58   : > { %p768_p11 = pneg %p767_p4  ;;  %p774_p12 = por %p773_p6, %p772_p1 }
  0x5a   : > { %p775_p13 = pnand %p774_p12, %p768_p11 }
  0x5c   : > { %778 = shalt.err (!%p775_p13)
}
  0x5d   : > { %634 = dma.hbm_to_vmem [thread:$0]  (!%p969_p3), %s1025_s21, 64, %s208_s6, %s197_s0  }
  0x5e   : > { %p1146_p7 = scmp.ne.s32.totalorder %s1140_s30, 0 }
  0x5f   : > { %s1050_s2 = sand.u32 (!%p1146_p7), 1, %s843_s18   ;;  %p1147_p5 = scmp.ne.s32.totalorder (!%p1146_p7), %s1137_s27, 0 }
  0x60   : > { %216 = sbr.rel (%p1146_p7) target bundleno = 472 (0x1d8), region = 36  ;;  %s568_s12 = sshll.u32 (!%p1146_p7), %s1050_s2, 6 }
  0x61   : > { %s219_s13 = scalar_lea.sflag (!%p1146_p7), [#allocation4], %s1050_s2  ;;  %s1054_s15 = scalar_lea.vmem (!%p1146_p7), [#allocation3], %s568_s12 }
  0x65   : > { %822 = dma.done.wait (%p1147_p5), %s219_s13, 1024  }
  0x66   : > { %824 = vsyncadd (%p1147_p5), %s219_s13, 4294966272  ;;  %s227_s0 = sand.u32 1, %s911_s3   ;;  %s569_s30 = sshll.u32 %s1050_s2, 2 }
  0x67   : > { %s228_s9 = scalar_lea.sflag [#allocation7], %s227_s0  ;;  %s1062_s21 = scalar_lea.vmem [#allocation6], %s569_s30 }
  0x68   : > { %826 = dma.done.wait (%p1147_p5), %s228_s9, 64  }
  0x69   : > { %828 = vsyncadd (%p1147_p5), %s228_s9, 4294967232  ;;  %p1148_p13 = scmp.eq.s32.totalorder %s911_s3, 0 }
  0x6b   : > { %830 = dma.done.wait (%p1148_p13), [#allocation7], 128   ;;  %p1149_p3 = pmov %p1148_p13 }
  0x6c   : > { %v859_v0 = vmov 0.0   ;;  %vm860_vm0 = vmmov 0   ;;  %v681_v1 = vld [vmem:[%s1054_s15 + $0x38] sm:$0xff]   ;;  %v682_v2 = vld [vmem:[%s1054_s15 + $0x30] sm:$0xff]   ;;  %v683_v3 = vld [vmem:[%s1054_s15 + $0x28] sm:$0xff]   ;;  %v373_v11 = vlaneseq  ;;  %vm385_vm3 = vcmask 1043456  }
  0x6d   : > { %832 = vsyncadd (%p1149_p3), [#allocation7], 4294967168  ;;  %594 = vmatprep.subr.bf16.mxu0 %v859_v0  ;;  %610 = vmatprep.mubr.msk.bf16.mxu0 %vm860_vm0, %v859_v0  ;;  %v684_v4 = vld [vmem:[%s1054_s15 + $0x20] sm:$0xff]   ;;  %v685_v5 = vld [vmem:[%s1054_s15 + $0x18] sm:$0xff]   ;;  %s406_s27 = sld [smem:[#allocation2]]  ;;  %s571_s23 = sshll.u32 %s1050_s2, 1 }
  0x6e   : > { %595 = vmatpush3.bf16.msra.mxu0 %v681_v1  ;;  %v686_v6 = vld [vmem:[%s1054_s15 + $0x10] sm:$0xff]   ;;  %v687_v7 = vld [vmem:[%s1054_s15 + $0x8] sm:$0xff]   ;;  %v688_v8 = vld [vmem:[%s1054_s15] sm:$0xff]   ;;  %v374_v12 = vshrl.u32 %v373_v11, 7  ;;  %s264_s6 = scalar_lea.vmem [#allocation9], %s571_s23  ;;  %s582_s8 = sshll.u32 %s911_s3, 5 }
  0x6f   : > { %596 = vmatprep.subr.bf16.mxu0 %v859_v0  ;;  %v282_v9 = vld [vmem:[#allocation8] sm:$0xff]  ;;  %v1081_v14 = vld [vmem:[%s1062_s21] sm:$0x7]  ;;  %s457_s16 = sshll.u32 %s264_s6, 4  ;;  %s455_s5 = scalar_lea.hbm %s1129_s4, %s582_s8  ;;  %s458_s16 = int_to_ptr.vmem [resolvable:$true] %s457_s16 }
  0x70   : > { %v283_v10 = vpack.c.bf16 %v282_v9, %v282_v9  ;;  %v378_v13 = vsub.s32 0, %v374_v12  ;;  %v375_v15 = vcvt.s32.f32 %v374_v12  ;;  %v420_v53 = vsub.f32 0.0, %v1081_v14  ;;  %s444_s7 = scalar_lea.sflag [#allocation5], %s1050_s2  ;;  %s779_s26 = scalar_lea.vmem %s458_s16, 32 }
  0x71   : > { %p780_p8 = scmp.ne.s32.totalorder %s458_s16, %s779_s26  ;;  %p1150_p9 = scmp.ne.s32.totalorder %s1138_s28, 0 }
  0x72   : > { %597 = vmatpush3.bf16.msra.mxu0 %v682_v2  ;;  %v379_v16 = vrot.slane %v1081_v14, %v378_v13  ;;  %s861_s10 = smov [#allocation9]  }
  0x73   : > { %598 = vmatprep.subr.bf16.mxu0 %v859_v0  ;;  %v418_v51 = vstv %s406_s27  ;;  %p781_p10 = pnand %p780_p8, %p1150_p9  ;;  %s783_s11 = sshll.u32 %s861_s10, 4  ;;  %s784_s11 = int_to_ptr.vmem [resolvable:$false] %s783_s11 }
  0x74   : > { %vm380_vm1 = vcmp.lt.f32.partialorder %v375_v15, %v379_v16  ;;  %s785_s12 = scalar_lea.vmem %s784_s11, 64  ;;  %p786_p0 = scmp.lt.s32.totalorder %s458_s16, %s784_s11 }
  0x75   : > { %v580_v17 = vsel %vm380_vm1, 1.0, %v859_v0  ;;  %p782_p2 = pneg %p781_p10  ;;  %p787_p4 = scmp.lt.s32.totalorder %s785_s12, %s779_s26 }
  0x76   : > { %599 = vmatpush3.bf16.msra.mxu0 %v683_v3  ;;  %vm383_vm2 = vcmp.gt.f32.partialorder %v580_v17, 0.0 }
  0x77   : > { %600 = vmatprep.subr.bf16.mxu0 %v859_v0  ;;  %p788_p11 = por %p787_p4, %p786_p0 }
  0x79   : > { %p789_p1 = pnand %p788_p11, %p782_p2 }
  0x7a   : > { %601 = vmatpush3.bf16.msra.mxu0 %v684_v4  ;;  %v438_v4 = vrot.slane %v1081_v14, 1 }
  0x7b   : > { %602 = vmatprep.subr.bf16.mxu0 %v859_v0 }
  0x7e   : > { %603 = vmatpush3.bf16.msra.mxu0 %v685_v5 }
  0x7f   : > { %604 = vmatprep.subr.bf16.mxu0 %v859_v0 }
  0x82   : > { %605 = vmatpush3.bf16.msra.mxu0 %v686_v6 }
  0x83   : > { %606 = vmatprep.subr.bf16.mxu0 %v859_v0 }
  0x86   : > { %607 = vmatpush3.bf16.msra.mxu0 %v687_v7 }
  0x87   : > { %608 = vmatprep.subr.bf16.mxu0 %v859_v0 }
  0x8a   : > { %609 = vmatpush3.bf16.msra.mxu0 %v688_v8 }
  0x8d   : > { %611 = vmatmul.mubr.bf16.vlgmr.msra.gmra.mxu0 %v283_v10 }
 0x14d   : > { %v366_v18 = vpop.f32.mrf.mxu0 }
 0x14e   : > { %v384_v19 = vsel %vm383_vm2, %v366_v18, -1e+30  ;;  %v408_v43 = vrot.slane %v366_v18, 4 }
 0x14f   : > { %v386_v20 = vsel %vm385_vm3, %v384_v19, -inf  ;;  %v612_v21 = vpop.f32.mrf.mxu0 }
 0x150   : > { %v387_v22 = vrot.slane %v386_v20, 4 }
 0x151   : > { %v369_v23 = vpop.f32.mrf.mxu0 }
 0x152   : > { %v388_v24 = vmax.f32 %v386_v20, %v387_v22 }
 0x153   : > { %v613_v25 = vpop.f32.mrf.mxu0 }
 0x154   : > { %v389_v26 = vrot.slane %v388_v24, 2 }
 0x156   : > { %v390_v27 = vmax.f32 %v388_v24, %v389_v26 }
 0x158   : > { %v391_v28 = vrot.slane %v390_v27, 1 }
 0x15a   : > { %v392_v29 = vmax.f32 %v390_v27, %v391_v28 }
 0x15c   : > { %v393_v30 = vsub.f32 %v384_v19, %v392_v29 }
 0x15e   : > { %v394_v31 = vmul.f32 1.442695, %v393_v30 }
 0x160   : > { %689 = vpow2.f32 %v394_v31 }
 0x16d   : > { %v690_v32 = vpop.eup %689 }
 0x16e   : > { %v396_v33 = vmul.f32 %v690_v32, %v580_v17 }
 0x170   : > { %v397_v34 = vsel %vm385_vm3, %v396_v33, 0.0 }
 0x171   : > { %v398_v35 = vrot.slane %v397_v34, 4 }
 0x173   : > { %v399_v36 = vadd.f32 %v398_v35, %v397_v34 }
 0x175   : > { %v400_v37 = vrot.slane %v399_v36, 2 }
 0x177   : > { %v401_v38 = vadd.f32 %v400_v37, %v399_v36 }
 0x179   : > { %v402_v39 = vrot.slane %v401_v38, 1 }
 0x17b   : > { %v403_v40 = vadd.f32 %v402_v39, %v401_v38 }
 0x17d   : > { %691 = vrcp.f32 %v403_v40 }
 0x18a   : > { %v692_v41 = vpop.eup %691 }
 0x18b   : > { %v405_v42 = vmul.f32 %v692_v41, %v396_v33 }
 0x18d   : > { %v410_v44 = vmul.f32 %v408_v43, %v405_v42 }
 0x18f   : > { %v411_v45 = vsel %vm385_vm3, %v410_v44, 0.0 }
 0x190   : > { %v412_v46 = vrot.slane %v411_v45, 4 }
 0x192   : > { %v413_v47 = vadd.f32 %v412_v46, %v411_v45 }
 0x194   : > { %v414_v48 = vrot.slane %v413_v47, 2 }
 0x196   : > { %v415_v49 = vadd.f32 %v414_v48, %v413_v47 }
 0x198   : > { %v416_v50 = vrot.slane %v415_v49, 1 }
 0x19a   : > { %v417_v52 = vadd.f32 %v416_v50, %v415_v49 }
 0x19c   : > { %v419_v54 = vadd.f32 %v418_v51, %v417_v52 }
 0x19e   : > { %v421_v55 = vmul.f32 %v420_v53, %v419_v54  ;;  %441 = vst [vmem:[%s264_s6] sm:$0x1] %v419_v54 }
 0x1a0   : > { %v423_v56 = vand.u32 2147483647, %v421_v55  ;;  %v422_v3 = vmax.f32 %v421_v55, 0.0 }
 0x1a2   : > { %v424_v57 = vsub.f32 0.0, %v423_v56 }
 0x1a4   : > { %v425_v58 = vmul.f32 1.442695, %v424_v57 }
 0x1a6   : > { %693 = vpow2.f32 %v425_v58 }
 0x1b3   : > { %v694_v59 = vpop.eup %693 }
 0x1b4   : > { %v427_v60 = vadd.f32 1.0, %v694_v59  ;;  %v430_v61 = vmul.f32 -0.5, %v694_v59  ;;  %v433_v63 = vand.u32 2147483647, %v694_v59 }
 0x1b6   : > { %695 = vlog2.f32 %v427_v60  ;;  %v431_v62 = vadd.f32 1.0, %v430_v61  ;;  %vm434_vm4 = vcmp.lt.f32.partialorder %v433_v63, 0.0004427343 }
 0x1b8   : > { %v432_v2 = vmul.f32 %v694_v59, %v431_v62 }
 0x1c3   : > { %v696_v0 = vpop.eup %695 }
 0x1c4   : > { %v429_v1 = vmul.f32 0.6931472, %v696_v0 }
 0x1c6   : > { %v435_v5 = vsel %vm434_vm4, %v432_v2, %v429_v1 }
 0x1c7   : > { %v436_v6 = vadd.f32 %v435_v5, %v422_v3 }
 0x1c9   : > { %v440_v7 = vmul.f32 %v438_v4, %v436_v6 }
 0x1cb   : > { %442 = vst [vmem:[%s264_s6] sm:$0x2] %v440_v7 }
 0x1cc   : > { %792 = shalt.err (!%p789_p1)
}
 0x1cd   : > { %s793_s3 = scalar_lea.hbm %s455_s5, 32  ;;  %s797_s15 = scalar_lea.hbm %s1129_s4, 64 }
 0x1ce   : > { %p794_p6 = scmp.ne.s32.totalorder %s455_s5, %s793_s3  ;;  %p798_p5 = scmp.lt.s32.totalorder %s455_s5, %s1129_s4 }
 0x1cf   : > { %p799_p13 = scmp.lt.s32.totalorder %s797_s15, %s793_s3 }
 0x1d0   : > { %p795_p12 = pnand %p794_p6, %p1150_p9 }
 0x1d1   : > { %p800_p3 = por %p799_p13, %p798_p5 }
 0x1d2   : > { %p796_p7 = pneg %p795_p12 }
 0x1d4   : > { %p801_p8 = pnand %p800_p3, %p796_p7 }
 0x1d6   : > { %804 = shalt.err (!%p801_p8)
}
 0x1d7   : > { %622 = dma.vmem_to_hbm [thread:$0]  (%p1150_p9), %s458_s16, 32, %s455_s5, %s444_s7  }
 0x1d8 PF: > { %s469_s9 = sand.u32 1, %s839_s17   ;;  %p1151_p10 = scmp.ne.s32.totalorder %s1139_s29, 0 }
 0x1d9   : > { %p1152_p2 = scmp.ge.s32.totalorder %s851_s20, 2  ;;  %s470_s21 = scalar_lea.sflag [#allocation5], %s469_s9 }
 0x1db   : > { %p636_p0 = pnand %p1152_p2, %p1151_p10 }
 0x1dd   : > { %p637_p4 = pneg %p636_p0 }
 0x1df   : > { %834 = dma.done.wait (%p637_p4), %s470_s21, 32  }
 0x1e0   : > { %836 = vsyncadd (%p637_p4), %s470_s21, 4294967264  ;;  %p21_p11 = scmp.ge.s32.totalorder %s915_s22, 4   ;;  %s1153_s17 = smov %s843_s18 }
 0x1e1   : > { %s1154_s18 = smov %s847_s19  ;;  %s1155_s19 = smov %s927_s25 }
 0x1e2   : > { %s1156_s20 = smov %s915_s22  ;;  %23 = sbr.rel (!%p21_p11) target bundleno = 11 (0xb), region = 98 }
 0x1e7   :  { %475 = vsyncpa [#allocation4], 1 }
 0x1e8   :  { %477 = vsyncpa [#allocation4 + $0x1], 1 }
 0x1e9   :  { %478 = vsyncpa [#allocation7], 1 }
 0x1ea   :  { %480 = vsyncpa [#allocation7 + $0x1], 1 }
 0x1eb   :  { %481 = vsyncpa [#allocation5], 1 }
 0x1ec   :  { %483 = vsyncpa [#allocation5 + $0x1], 1 }

</bundles_post_ra>
